<compile_context>
chip_gen: v6e
topology: v6e:2x2x1
jax: 0.10.0
libtpu: 0.0.40
codegen_flags: <defaults>
</compile_context>

<pallas_src>
import jax
import jax.numpy as jnp
from jax.experimental import pallas as pl
from jax.experimental.pallas import tpu as pltpu

VOCAB = 256


def _dot32(a, w):
    """MXU matmul with f32 accumulation."""
    return jnp.dot(a, w, preferred_element_type=jnp.float32)


# ------------------------------ fused model kernel -----------------------------
def fused_kernel(x_emb_ref,                                   # [S, H]  (batch b)
                 wc_ref, bc_ref, wdg_ref, bdg_ref, wne_ref, bne_ref,   # neuromod
                 wf_ref, bf_ref, wp_ref, lnw_ref, lnb_ref,             # layer l
                 wout_ref, bout_ref,                                    # out proj
                 logits_ref,                                            # [S, V]
                 x_vmem):                                               # [S, H] f32 scratch
    l = pl.program_id(1)
    num_layers = pl.num_programs(1)

    # --- NeurotransmitterModule: applied once per batch element, before layer 0 ---
    @pl.when(l == 0)
    def _neuromod():
        x = x_emb_ref[...]                                    # [S, H] f32
        ctx = jnp.mean(x, axis=0, keepdims=True)              # [1, H]
        nm = _dot32(ctx, wc_ref[...]) + bc_ref[...]           # [1, 2] (tiny, f32)
        dopamine = nm[:, 0:1]                                 # [1, 1]
        norepinephrine = nm[:, 1:2]                           # [1, 1]
        x_gate = jax.nn.sigmoid(
            _dot32(x.astype(jnp.bfloat16), wdg_ref[...]) + bdg_ref[...])
        x_mod = x * (1.0 + dopamine * x_gate)
        x_noise = jnp.tanh(
            _dot32(x_mod.astype(jnp.bfloat16), wne_ref[...]) + bne_ref[...])
        x_vmem[...] = x_mod + norepinephrine * x_noise

    # --- layer l: NeuroplasticityLayer + residual + LayerNorm ---
    # (energy / gain-controlled attention branches are dead w.r.t. the logits
    #  and are intentionally skipped — see module docstring.)
    x = x_vmem[...]                                           # [S, H] f32
    xb = x.astype(jnp.bfloat16)
    fixed_out = _dot32(xb, wf_ref[...]) + bf_ref[...]
    plastic_out = _dot32(xb, wp_ref[...])
    y = x + fixed_out + plastic_out
    mean = jnp.mean(y, axis=-1, keepdims=True)
    var = jnp.mean(jnp.square(y - mean), axis=-1, keepdims=True)
    x_new = (y - mean) * jax.lax.rsqrt(var + 1e-5) * lnw_ref[...] + lnb_ref[...]
    x_vmem[...] = x_new

    # --- final vocab projection, after the last layer ---
    @pl.when(l == num_layers - 1)
    def _out_proj():
        logits_ref[...] = _dot32(x_new.astype(jnp.bfloat16), wout_ref[...]) + bout_ref[...]


def opengrammar_forward(tokens, params):
    tok = jnp.clip(tokens, 0, 255).astype(jnp.int32)           # [B, S]
    x_emb = params['embedding'][tok]                           # [B, S, H] (glue gather)
    B, S, H = x_emb.shape
    L = params['wf'].shape[0]
    bf16 = jnp.bfloat16

    def shared(shape):
        # Full-array operand; constant block index -> DMA'd once for the whole grid.
        return pl.BlockSpec(shape, lambda b, l, _n=len(shape): (0,) * _n)

    per_layer_mat = pl.BlockSpec((None, H, H), lambda b, l: (l, 0, 0))   # kernel sees [H, H]
    per_layer_vec = pl.BlockSpec((None, 1, H), lambda b, l: (l, 0, 0))   # kernel sees [1, H]

    in_specs = [
        pl.BlockSpec((None, S, H), lambda b, l: (b, 0, 0)),    # x_emb  -> [S, H]
        shared((H, 2)), shared((1, 2)),                        # wc, bc
        shared((H, H)), shared((1, H)),                        # wdg, bdg
        shared((H, H)), shared((1, H)),                        # wne, bne
        per_layer_mat, per_layer_vec,                          # wf, bf
        per_layer_mat,                                         # wp
        per_layer_vec, per_layer_vec,                          # lnw, lnb
        shared((H, VOCAB)), shared((1, VOCAB)),                # wout, bout
    ]
    out_spec = pl.BlockSpec((None, S, VOCAB), lambda b, l: (b, 0, 0))    # [S, V], lane-dense

    return pl.pallas_call(
        fused_kernel,
        out_shape=jax.ShapeDtypeStruct((B, S, VOCAB), jnp.float32),
        grid=(B, L),
        in_specs=in_specs,
        out_specs=out_spec,
        scratch_shapes=[pltpu.VMEM((S, H), jnp.float32)],       # x resident across layers
        compiler_params=pltpu.CompilerParams(
            dimension_semantics=("parallel", "arbitrary"),
            vmem_limit_bytes=32 * 1024 * 1024),
    )(x_emb,
      params['wc'], params['bc'],
      params['wdg'].astype(bf16), params['bdg'],
      params['wne'].astype(bf16), params['bne'],
      params['wf'].astype(bf16), params['bf'],
      params['wp'].astype(bf16),
      params['lnw'], params['lnb'],
      params['wout'].astype(bf16), params['bout'])


# ------------------------------ pure-JAX reference -----------------------------
def reference_forward(tokens, params):
    tok = jnp.clip(tokens, 0, 255).astype(jnp.int32)
    x = params['embedding'][tok]
    ctx = jnp.mean(x, axis=1)
    nm = ctx @ params['wc'] + params['bc']
    dop, nor = nm[:, 0:1][:, None, :], nm[:, 1:2][:, None, :]
    x_gate = jax.nn.sigmoid(x @ params['wdg'] + params['bdg'])
    x = x * (1.0 + dop * x_gate)
    x = x + nor * jnp.tanh(x @ params['wne'] + params['bne'])
    for l in range(params['wf'].shape[0]):
        combined = (x @ params['wf'][l] + params['bf'][l]) + x @ params['wp'][l]
        y = x + combined
        mean = jnp.mean(y, axis=-1, keepdims=True)
        var = jnp.mean((y - mean) ** 2, axis=-1, keepdims=True)
        x = (y - mean) * jax.lax.rsqrt(var + 1e-5) * params['lnw'][l] + params['lnb'][l]
    return x @ params['wout'] + params['bout']


# --------------------------------- parameters ----------------------------------
def init_params(key, hidden_size, layer_count):
    keys = iter(jax.random.split(key, 16))

    def w(shape, scale=0.05):
        return scale * jax.random.normal(next(keys), shape, jnp.float32)

    H, L = hidden_size, layer_count
    return {
        'embedding': w((VOCAB, H), 0.02),
        # NeurotransmitterModule
        'wc': w((H, 2)), 'bc': w((1, 2)),
        'wdg': w((H, H)), 'bdg': w((1, H)),
        'wne': w((H, H)), 'bne': w((1, H)),
        # per-layer NeuroplasticityLayer + LayerNorm, stacked over layers
        'wf': w((L, H, H)), 'bf': w((L, 1, H)),
        'wp': w((L, H, H), 0.1),                               # xavier-ish plastic weights
        'lnw': jnp.ones((L, 1, H), jnp.float32),
        'lnb': jnp.zeros((L, 1, H), jnp.float32),
        # output projection
        'wout': w((H, VOCAB)), 'bout': w((1, VOCAB)),
    }


if __name__ == "__main__":
    B, S, H, L = 2, 8, 32, 2
    key = jax.random.PRNGKey(0)
    k_tok, k_par = jax.random.split(key)

    tokens = jax.random.randint(k_tok, (B, S), 0, 256, dtype=jnp.int32)
    params = init_params(k_par, H, L)

    fwd = jax.jit(opengrammar_forward)
    logits = jax.block_until_ready(fwd(tokens, params))
    assert logits.shape == (B, S, VOCAB) and logits.dtype == jnp.float32

    ref = jax.block_until_ready(reference_forward(tokens, params))
    assert jnp.allclose(logits, ref, atol=2e-2, rtol=2e-2), "mismatch vs JAX reference"

    print("KERNEL_OK")
</pallas_src>

<mosaic_0001>
module attributes {stable_mosaic.version = 11 : i64} {
  func.func @fused_kernel(%arg0: i32, %arg1: i32, %arg2: memref<1x8x32xf32, #tpu.memory_space<vmem>>, %arg3: memref<32x2xf32, #tpu.memory_space<vmem>>, %arg4: memref<1x2xf32, #tpu.memory_space<vmem>>, %arg5: memref<32x32xbf16, #tpu.memory_space<vmem>>, %arg6: memref<1x32xf32, #tpu.memory_space<vmem>>, %arg7: memref<32x32xbf16, #tpu.memory_space<vmem>>, %arg8: memref<1x32xf32, #tpu.memory_space<vmem>>, %arg9: memref<1x32x32xbf16, #tpu.memory_space<vmem>>, %arg10: memref<1x1x32xf32, #tpu.memory_space<vmem>>, %arg11: memref<1x32x32xbf16, #tpu.memory_space<vmem>>, %arg12: memref<1x1x32xf32, #tpu.memory_space<vmem>>, %arg13: memref<1x1x32xf32, #tpu.memory_space<vmem>>, %arg14: memref<32x256xbf16, #tpu.memory_space<vmem>>, %arg15: memref<1x256xf32, #tpu.memory_space<vmem>>, %arg16: memref<1x8x256xf32, #tpu.memory_space<vmem>>, %arg17: memref<8x32xf32, #tpu.memory_space<vmem>>) attributes {dimension_semantics = [#tpu.dimension_semantics<parallel>, #tpu.dimension_semantics<arbitrary>], iteration_bounds = array<i64: 2, 2>, scalar_prefetch = 0 : i64, scratch_operands = 1 : i64, tpu.core_type = #tpu.core_type<tc>, window_params = [{transform_indices = @transform_0, window_bounds = array<i64: 1, 8, 32>}, {pipeline_mode = #tpu.pipeline_mode<synchronous>, transform_indices = @transform_1, window_bounds = array<i64: 32, 2>}, {pipeline_mode = #tpu.pipeline_mode<synchronous>, transform_indices = @transform_2, window_bounds = array<i64: 1, 2>}, {pipeline_mode = #tpu.pipeline_mode<synchronous>, transform_indices = @transform_3, window_bounds = array<i64: 32, 32>}, {pipeline_mode = #tpu.pipeline_mode<synchronous>, transform_indices = @transform_4, window_bounds = array<i64: 1, 32>}, {pipeline_mode = #tpu.pipeline_mode<synchronous>, transform_indices = @transform_5, window_bounds = array<i64: 32, 32>}, {pipeline_mode = #tpu.pipeline_mode<synchronous>, transform_indices = @transform_6, window_bounds = array<i64: 1, 32>}, {transform_indices = @transform_7, window_bounds = array<i64: 1, 32, 32>}, {transform_indices = @transform_8, window_bounds = array<i64: 1, 1, 32>}, {transform_indices = @transform_9, window_bounds = array<i64: 1, 32, 32>}, {transform_indices = @transform_10, window_bounds = array<i64: 1, 1, 32>}, {transform_indices = @transform_11, window_bounds = array<i64: 1, 1, 32>}, {pipeline_mode = #tpu.pipeline_mode<synchronous>, transform_indices = @transform_12, window_bounds = array<i64: 32, 256>}, {pipeline_mode = #tpu.pipeline_mode<synchronous>, transform_indices = @transform_13, window_bounds = array<i64: 1, 256>}, {transform_indices = @transform_14, window_bounds = array<i64: 1, 8, 256>}]} {
    %c0_i32 = arith.constant 0 : i32
    %0 = arith.cmpi eq, %arg1, %c0_i32 : i32
    %1 = arith.extui %0 : i1 to i32
    %c0_i32_0 = arith.constant 0 : i32
    %2 = arith.cmpi ne, %1, %c0_i32_0 : i32
    scf.if %2 {
      %c0_26 = arith.constant 0 : index
      %c0_27 = arith.constant 0 : index
      %c0_28 = arith.constant 0 : index
      %47 = vector.load %arg2[%c0_26, %c0_27, %c0_28] : memref<1x8x32xf32, #tpu.memory_space<vmem>>, vector<1x8x32xf32>
      %48 = vector.shape_cast %47 : vector<1x8x32xf32> to vector<8x32xf32>
      %cst_29 = arith.constant dense<0.000000e+00> : vector<32xf32>
      %49 = vector.multi_reduction <add>, %48, %cst_29 [0] : vector<8x32xf32> to vector<32xf32>
      %50 = vector.shape_cast %49 : vector<32xf32> to vector<1x32xf32>
      %cst_30 = arith.constant 8.000000e+00 : f32
      %51 = vector.broadcast %cst_30 : f32 to vector<1x32xf32>
      %52 = arith.divf %50, %51 : vector<1x32xf32>
      %c0_31 = arith.constant 0 : index
      %c0_32 = arith.constant 0 : index
      %53 = vector.load %arg3[%c0_31, %c0_32] : memref<32x2xf32, #tpu.memory_space<vmem>>, vector<32x2xf32>
      %cst_33 = arith.constant dense<0.000000e+00> : vector<1x2xf32>
      %54 = tpu.matmul %52, %53, %cst_33 {dimension_numbers = #tpu.dot_dimension_numbers<[1], [0], [0], [1], [0, 0, 1, 1], [], []>} : vector<1x32xf32>, vector<32x2xf32>, vector<1x2xf32> -> vector<1x2xf32>
      %c0_34 = arith.constant 0 : index
      %c0_35 = arith.constant 0 : index
      %55 = vector.load %arg4[%c0_34, %c0_35] : memref<1x2xf32, #tpu.memory_space<vmem>>, vector<1x2xf32>
      %56 = arith.addf %54, %55 : vector<1x2xf32>
      %57 = vector.extract_strided_slice %56 {offsets = [0, 0], sizes = [1, 1], strides = [1, 1]} : vector<1x2xf32> to vector<1x1xf32>
      %58 = vector.extract_strided_slice %56 {offsets = [0, 1], sizes = [1, 1], strides = [1, 1]} : vector<1x2xf32> to vector<1x1xf32>
      %59 = arith.truncf %48 : vector<8x32xf32> to vector<8x32xbf16>
      %c0_36 = arith.constant 0 : index
      %c0_37 = arith.constant 0 : index
      %60 = vector.load %arg5[%c0_36, %c0_37] : memref<32x32xbf16, #tpu.memory_space<vmem>>, vector<32x32xbf16>
      %cst_38 = arith.constant dense<0.000000e+00> : vector<8x32xf32>
      %61 = tpu.matmul %59, %60, %cst_38 {dimension_numbers = #tpu.dot_dimension_numbers<[1], [0], [0], [1], [0, 0, 1, 1], [], []>} : vector<8x32xbf16>, vector<32x32xbf16>, vector<8x32xf32> -> vector<8x32xf32>
      %c0_39 = arith.constant 0 : index
      %c0_40 = arith.constant 0 : index
      %62 = vector.load %arg6[%c0_39, %c0_40] : memref<1x32xf32, #tpu.memory_space<vmem>>, vector<1x32xf32>
      %63 = vector.broadcast %62 : vector<1x32xf32> to vector<8x32xf32>
      %64 = arith.addf %61, %63 : vector<8x32xf32>
      %65 = arith.negf %64 : vector<8x32xf32>
      %66 = math.exp %65 : vector<8x32xf32>
      %cst_41 = arith.constant 1.000000e+00 : f32
      %67 = vector.broadcast %cst_41 : f32 to vector<8x32xf32>
      %68 = arith.addf %67, %66 : vector<8x32xf32>
      %69 = arith.divf %67, %68 : vector<8x32xf32>
      %70 = vector.broadcast %57 : vector<1x1xf32> to vector<8x32xf32>
      %71 = arith.mulf %70, %69 : vector<8x32xf32>
      %cst_42 = arith.constant 1.000000e+00 : f32
      %72 = vector.broadcast %cst_42 : f32 to vector<8x32xf32>
      %73 = arith.addf %72, %71 : vector<8x32xf32>
      %74 = arith.mulf %48, %73 : vector<8x32xf32>
      %75 = arith.truncf %74 : vector<8x32xf32> to vector<8x32xbf16>
      %c0_43 = arith.constant 0 : index
      %c0_44 = arith.constant 0 : index
      %76 = vector.load %arg7[%c0_43, %c0_44] : memref<32x32xbf16, #tpu.memory_space<vmem>>, vector<32x32xbf16>
      %cst_45 = arith.constant dense<0.000000e+00> : vector<8x32xf32>
      %77 = tpu.matmul %75, %76, %cst_45 {dimension_numbers = #tpu.dot_dimension_numbers<[1], [0], [0], [1], [0, 0, 1, 1], [], []>} : vector<8x32xbf16>, vector<32x32xbf16>, vector<8x32xf32> -> vector<8x32xf32>
      %c0_46 = arith.constant 0 : index
      %c0_47 = arith.constant 0 : index
      %78 = vector.load %arg8[%c0_46, %c0_47] : memref<1x32xf32, #tpu.memory_space<vmem>>, vector<1x32xf32>
      %79 = vector.broadcast %78 : vector<1x32xf32> to vector<8x32xf32>
      %80 = arith.addf %77, %79 : vector<8x32xf32>
      %81 = math.tanh %80 : vector<8x32xf32>
      %82 = vector.broadcast %58 : vector<1x1xf32> to vector<8x32xf32>
      %83 = arith.mulf %82, %81 : vector<8x32xf32>
      %84 = arith.addf %74, %83 : vector<8x32xf32>
      %c0_48 = arith.constant 0 : index
      %c0_49 = arith.constant 0 : index
      %85 = vector.load %arg17[%c0_48, %c0_49] : memref<8x32xf32, #tpu.memory_space<vmem>>, vector<8x32xf32>
      tpu.vector_store %arg17[%c0_48, %c0_49], %84 {strides = array<i32>} : memref<8x32xf32, #tpu.memory_space<vmem>>, vector<8x32xf32>,
    } else {
    }
    %c0 = arith.constant 0 : index
    %c0_1 = arith.constant 0 : index
    %3 = vector.load %arg17[%c0, %c0_1] : memref<8x32xf32, #tpu.memory_space<vmem>>, vector<8x32xf32>
    %4 = arith.truncf %3 : vector<8x32xf32> to vector<8x32xbf16>
    %c0_2 = arith.constant 0 : index
    %c0_3 = arith.constant 0 : index
    %c0_4 = arith.constant 0 : index
    %5 = vector.load %arg9[%c0_2, %c0_3, %c0_4] : memref<1x32x32xbf16, #tpu.memory_space<vmem>>, vector<1x32x32xbf16>
    %6 = vector.shape_cast %5 : vector<1x32x32xbf16> to vector<32x32xbf16>
    %cst = arith.constant dense<0.000000e+00> : vector<8x32xf32>
    %7 = tpu.matmul %4, %6, %cst {dimension_numbers = #tpu.dot_dimension_numbers<[1], [0], [0], [1], [0, 0, 1, 1], [], []>} : vector<8x32xbf16>, vector<32x32xbf16>, vector<8x32xf32> -> vector<8x32xf32>
    %c0_5 = arith.constant 0 : index
    %c0_6 = arith.constant 0 : index
    %c0_7 = arith.constant 0 : index
    %8 = vector.load %arg10[%c0_5, %c0_6, %c0_7] : memref<1x1x32xf32, #tpu.memory_space<vmem>>, vector<1x1x32xf32>
    %9 = vector.shape_cast %8 : vector<1x1x32xf32> to vector<1x32xf32>
    %10 = vector.broadcast %9 : vector<1x32xf32> to vector<8x32xf32>
    %11 = arith.addf %7, %10 : vector<8x32xf32>
    %c0_8 = arith.constant 0 : index
    %c0_9 = arith.constant 0 : index
    %c0_10 = arith.constant 0 : index
    %12 = vector.load %arg11[%c0_8, %c0_9, %c0_10] : memref<1x32x32xbf16, #tpu.memory_space<vmem>>, vector<1x32x32xbf16>
    %13 = vector.shape_cast %12 : vector<1x32x32xbf16> to vector<32x32xbf16>
    %cst_11 = arith.constant dense<0.000000e+00> : vector<8x32xf32>
    %14 = tpu.matmul %4, %13, %cst_11 {dimension_numbers = #tpu.dot_dimension_numbers<[1], [0], [0], [1], [0, 0, 1, 1], [], []>} : vector<8x32xbf16>, vector<32x32xbf16>, vector<8x32xf32> -> vector<8x32xf32>
    %15 = arith.addf %3, %11 : vector<8x32xf32>
    %16 = arith.addf %15, %14 : vector<8x32xf32>
    %cst_12 = arith.constant dense<0.000000e+00> : vector<8xf32>
    %17 = vector.multi_reduction <add>, %16, %cst_12 [1] : vector<8x32xf32> to vector<8xf32>
    %18 = vector.shape_cast %17 : vector<8xf32> to vector<8x1xf32>
    %cst_13 = arith.constant 3.200000e+01 : f32
    %19 = vector.broadcast %cst_13 : f32 to vector<8x1xf32>
    %20 = arith.divf %18, %19 : vector<8x1xf32>
    %21 = vector.broadcast %20 : vector<8x1xf32> to vector<8x32xf32>
    %22 = arith.subf %16, %21 : vector<8x32xf32>
    %23 = arith.mulf %22, %22 : vector<8x32xf32>
    %cst_14 = arith.constant dense<0.000000e+00> : vector<8xf32>
    %24 = vector.multi_reduction <add>, %23, %cst_14 [1] : vector<8x32xf32> to vector<8xf32>
    %25 = vector.shape_cast %24 : vector<8xf32> to vector<8x1xf32>
    %cst_15 = arith.constant 3.200000e+01 : f32
    %26 = vector.broadcast %cst_15 : f32 to vector<8x1xf32>
    %27 = arith.divf %25, %26 : vector<8x1xf32>
    %28 = vector.broadcast %20 : vector<8x1xf32> to vector<8x32xf32>
    %29 = arith.subf %16, %28 : vector<8x32xf32>
    %cst_16 = arith.constant 9.99999974E-6 : f32
    %30 = vector.broadcast %cst_16 : f32 to vector<8x1xf32>
    %31 = arith.addf %27, %30 : vector<8x1xf32>
    %32 = math.rsqrt %31 : vector<8x1xf32>
    %33 = vector.broadcast %32 : vector<8x1xf32> to vector<8x32xf32>
    %34 = arith.mulf %29, %33 : vector<8x32xf32>
    %c0_17 = arith.constant 0 : index
    %c0_18 = arith.constant 0 : index
    %c0_19 = arith.constant 0 : index
    %35 = vector.load %arg12[%c0_17, %c0_18, %c0_19] : memref<1x1x32xf32, #tpu.memory_space<vmem>>, vector<1x1x32xf32>
    %36 = vector.shape_cast %35 : vector<1x1x32xf32> to vector<1x32xf32>
    %37 = vector.broadcast %36 : vector<1x32xf32> to vector<8x32xf32>
    %38 = arith.mulf %34, %37 : vector<8x32xf32>
    %c0_20 = arith.constant 0 : index
    %c0_21 = arith.constant 0 : index
    %c0_22 = arith.constant 0 : index
    %39 = vector.load %arg13[%c0_20, %c0_21, %c0_22] : memref<1x1x32xf32, #tpu.memory_space<vmem>>, vector<1x1x32xf32>
    %40 = vector.shape_cast %39 : vector<1x1x32xf32> to vector<1x32xf32>
    %41 = vector.broadcast %40 : vector<1x32xf32> to vector<8x32xf32>
    %42 = arith.addf %38, %41 : vector<8x32xf32>
    %c0_23 = arith.constant 0 : index
    %c0_24 = arith.constant 0 : index
    %43 = vector.load %arg17[%c0_23, %c0_24] : memref<8x32xf32, #tpu.memory_space<vmem>>, vector<8x32xf32>
    tpu.vector_store %arg17[%c0_23, %c0_24], %42 {strides = array<i32>} : memref<8x32xf32, #tpu.memory_space<vmem>>, vector<8x32xf32>,
    %c1_i32 = arith.constant 1 : i32
    %44 = arith.cmpi eq, %arg1, %c1_i32 : i32
    %45 = arith.extui %44 : i1 to i32
    %c0_i32_25 = arith.constant 0 : i32
    %46 = arith.cmpi ne, %45, %c0_i32_25 : i32
    scf.if %46 {
      %47 = arith.truncf %42 : vector<8x32xf32> to vector<8x32xbf16>
      %c0_26 = arith.constant 0 : index
      %c0_27 = arith.constant 0 : index
      %48 = vector.load %arg14[%c0_26, %c0_27] : memref<32x256xbf16, #tpu.memory_space<vmem>>, vector<32x256xbf16>
      %cst_28 = arith.constant dense<0.000000e+00> : vector<8x256xf32>
      %49 = tpu.matmul %47, %48, %cst_28 {dimension_numbers = #tpu.dot_dimension_numbers<[1], [0], [0], [1], [0, 0, 1, 1], [], []>} : vector<8x32xbf16>, vector<32x256xbf16>, vector<8x256xf32> -> vector<8x256xf32>
      %c0_29 = arith.constant 0 : index
      %c0_30 = arith.constant 0 : index
      %50 = vector.load %arg15[%c0_29, %c0_30] : memref<1x256xf32, #tpu.memory_space<vmem>>, vector<1x256xf32>
      %51 = vector.broadcast %50 : vector<1x256xf32> to vector<8x256xf32>
      %52 = arith.addf %49, %51 : vector<8x256xf32>
      %c0_31 = arith.constant 0 : index
      %c0_32 = arith.constant 0 : index
      %c0_33 = arith.constant 0 : index
      %53 = vector.load %arg16[%c0_31, %c0_32, %c0_33] : memref<1x8x256xf32, #tpu.memory_space<vmem>>, vector<1x8x256xf32>
      %54 = vector.shape_cast %53 : vector<1x8x256xf32> to vector<8x256xf32>
      %55 = vector.shape_cast %52 : vector<8x256xf32> to vector<1x8x256xf32>
      tpu.vector_store %arg16[%c0_31, %c0_32, %c0_33], %55 {strides = array<i32>} : memref<1x8x256xf32, #tpu.memory_space<vmem>>, vector<1x8x256xf32>,
    } else {
    }
    return
  }
  func.func @transform_0(%arg0: i32, %arg1: i32) -> (i32, i32, i32) {
    %c0_i32 = arith.constant 0 : i32
    %c0_i32_0 = arith.constant 0 : i32
    %c0_i32_1 = arith.constant 0 : i32
    return %arg0, %c0_i32, %c0_i32_0 : i32, i32, i32
  }
  func.func @transform_1(%arg0: i32, %arg1: i32) -> (i32, i32) {
    %c0_i32 = arith.constant 0 : i32
    %c0_i32_0 = arith.constant 0 : i32
    %c0_i32_1 = arith.constant 0 : i32
    return %c0_i32, %c0_i32_0 : i32, i32
  }
  func.func @transform_2(%arg0: i32, %arg1: i32) -> (i32, i32) {
    %c0_i32 = arith.constant 0 : i32
    %c0_i32_0 = arith.constant 0 : i32
    %c0_i32_1 = arith.constant 0 : i32
    return %c0_i32, %c0_i32_0 : i32, i32
  }
  func.func @transform_3(%arg0: i32, %arg1: i32) -> (i32, i32) {
    %c0_i32 = arith.constant 0 : i32
    %c0_i32_0 = arith.constant 0 : i32
    %c0_i32_1 = arith.constant 0 : i32
    return %c0_i32, %c0_i32_0 : i32, i32
  }
  func.func @transform_4(%arg0: i32, %arg1: i32) -> (i32, i32) {
    %c0_i32 = arith.constant 0 : i32
    %c0_i32_0 = arith.constant 0 : i32
    %c0_i32_1 = arith.constant 0 : i32
    return %c0_i32, %c0_i32_0 : i32, i32
  }
  func.func @transform_5(%arg0: i32, %arg1: i32) -> (i32, i32) {
    %c0_i32 = arith.constant 0 : i32
    %c0_i32_0 = arith.constant 0 : i32
    %c0_i32_1 = arith.constant 0 : i32
    return %c0_i32, %c0_i32_0 : i32, i32
  }
  func.func @transform_6(%arg0: i32, %arg1: i32) -> (i32, i32) {
    %c0_i32 = arith.constant 0 : i32
    %c0_i32_0 = arith.constant 0 : i32
    %c0_i32_1 = arith.constant 0 : i32
    return %c0_i32, %c0_i32_0 : i32, i32
  }
  func.func @transform_7(%arg0: i32, %arg1: i32) -> (i32, i32, i32) {
    %c0_i32 = arith.constant 0 : i32
    %c0_i32_0 = arith.constant 0 : i32
    %c0_i32_1 = arith.constant 0 : i32
    return %arg1, %c0_i32, %c0_i32_0 : i32, i32, i32
  }
  func.func @transform_8(%arg0: i32, %arg1: i32) -> (i32, i32, i32) {
    %c0_i32 = arith.constant 0 : i32
    %c0_i32_0 = arith.constant 0 : i32
    %c0_i32_1 = arith.constant 0 : i32
    return %arg1, %c0_i32, %c0_i32_0 : i32, i32, i32
  }
  func.func @transform_9(%arg0: i32, %arg1: i32) -> (i32, i32, i32) {
    %c0_i32 = arith.constant 0 : i32
    %c0_i32_0 = arith.constant 0 : i32
    %c0_i32_1 = arith.constant 0 : i32
    return %arg1, %c0_i32, %c0_i32_0 : i32, i32, i32
  }
  func.func @transform_10(%arg0: i32, %arg1: i32) -> (i32, i32, i32) {
    %c0_i32 = arith.constant 0 : i32
    %c0_i32_0 = arith.constant 0 : i32
    %c0_i32_1 = arith.constant 0 : i32
    return %arg1, %c0_i32, %c0_i32_0 : i32, i32, i32
  }
  func.func @transform_11(%arg0: i32, %arg1: i32) -> (i32, i32, i32) {
    %c0_i32 = arith.constant 0 : i32
    %c0_i32_0 = arith.constant 0 : i32
    %c0_i32_1 = arith.constant 0 : i32
    return %arg1, %c0_i32, %c0_i32_0 : i32, i32, i32
  }
  func.func @transform_12(%arg0: i32, %arg1: i32) -> (i32, i32) {
    %c0_i32 = arith.constant 0 : i32
    %c0_i32_0 = arith.constant 0 : i32
    %c0_i32_1 = arith.constant 0 : i32
    return %c0_i32, %c0_i32_0 : i32, i32
  }
  func.func @transform_13(%arg0: i32, %arg1: i32) -> (i32, i32) {
    %c0_i32 = arith.constant 0 : i32
    %c0_i32_0 = arith.constant 0 : i32
    %c0_i32_1 = arith.constant 0 : i32
    return %c0_i32, %c0_i32_0 : i32, i32
  }
  func.func @transform_14(%arg0: i32, %arg1: i32) -> (i32, i32, i32) {
    %c0_i32 = arith.constant 0 : i32
    %c0_i32_0 = arith.constant 0 : i32
    %c0_i32_1 = arith.constant 0 : i32
    return %arg0, %c0_i32, %c0_i32_0 : i32, i32, i32
  }
}

</mosaic_0001>

<bundles_post_ra>
// kernel: opengrammar_forward.1
= control target key start
LH: loop header
LB: loop body
LE: loop exit
PB: predicated region body
PF: predicated region fallthrough
CT: control target
= control target key end

     0   :  { %s1810_s0 = inlined_call_operand.vmem [shape: f32[2,8,32], index: 0, kind: input, shape index: {}]   ;;  %s1811_s1 = inlined_call_operand.vmem [shape: f32[32,2], index: 1, kind: input, shape index: {}]   ;;  %s1812_s2 = inlined_call_operand.vmem [shape: f32[1,2], index: 2, kind: input, shape index: {}]   ;;  %s1813_s3 = inlined_call_operand.vmem [shape: bf16[32,32], index: 3, kind: input, shape index: {}]   ;;  %s1814_s4 = inlined_call_operand.vmem [shape: f32[1,32], index: 4, kind: input, shape index: {}]   ;;  %s1815_s5 = inlined_call_operand.vmem [shape: bf16[32,32], index: 5, kind: input, shape index: {}]   ;;  %s1816_s6 = inlined_call_operand.vmem [shape: f32[1,32], index: 6, kind: input, shape index: {}]   ;;  %s1817_s7 = inlined_call_operand.vmem [shape: bf16[2,32,32], index: 7, kind: input, shape index: {}]   ;;  %s1818_s8 = inlined_call_operand.vmem [shape: f32[2,1,32], index: 8, kind: input, shape index: {}]   ;;  %s1819_s9 = inlined_call_operand.vmem [shape: bf16[2,32,32], index: 9, kind: input, shape index: {}]   ;;  %s1820_s10 = inlined_call_operand.vmem [shape: f32[2,1,32], index: 10, kind: input, shape index: {}]   ;;  %s1821_s11 = inlined_call_operand.vmem [shape: f32[2,1,32], index: 11, kind: input, shape index: {}]   ;;  %s1822_s12 = inlined_call_operand.vmem [shape: bf16[32,256], index: 12, kind: input, shape index: {}]   ;;  %s1823_s13 = inlined_call_operand.vmem [shape: f32[1,256], index: 13, kind: input, shape index: {}]   ;;  %s1824_s14 = inlined_call_operand.hbm [shape: f32[2,8,256], index: 14, kind: output, shape index: {}]  }
   0x1   :  { %1840 = sst [smem:[#allocation18_spill]] %s1810_s0 }
   0x2   :  { %1841 = sst [smem:[#allocation19_spill]] %s1822_s12 }
   0x3   :  { %1842 = sst [smem:[#allocation20_spill]] %s1823_s13 }
   0x4   :  { %1843 = sst [smem:[#allocation21_spill]] %s1824_s14 }
   0x5   :  { %19 = vsyncpa [#allocation4], 0 }
   0x6   :  { %21 = vsyncpa [#allocation4 + $0x1], 0  ;;  %s1572_s29 = smov 0   ;;  %s1574_s30 = smov 0  }
   0x7   :  { %s1576_s15 = smov 0   ;;  %s1578_s16 = smov 0  }
   0x8   :  { %s1580_s17 = smov 0   ;;  %s1582_s18 = smov 0  }
   0x9   :  { %s1584_s19 = smov 0   ;;  %s1586_s20 = smov 0  }
   0xa LB: > { %1844 = sst [smem:[#allocation6_spill]] %s1460_s29  ;;  %s1188_s21 = sadd.s32 4294967295, %s1488_s20   ;;  %s1488_s20 = sphi %s1586_s20, %s27_s20   ;;  %s1484_s19 = sphi %s1584_s19, %s1876_s19   ;;  %s1480_s18 = sphi %s1582_s18, %s1875_s18   ;;  %s1476_s17 = sphi %s1580_s17, %s1874_s17   ;;  %s1472_s16 = sphi %s1578_s16, %s1873_s16   ;;  %s1468_s15 = sphi %s1576_s15, %s1872_s15   ;;  %s1464_s30 = sphi %s1574_s30, %s1871_s30   ;;  %s1460_s29 = sphi %s1572_s29, %s1870_s29  }
   0xb   : > { %1845 = sst [smem:[#allocation7_spill]] %s1464_s30  ;;  %s1189_s22 = sadd.s32 4294967294, %s1488_s20  }
   0xc   : > { %1846 = sst [smem:[#allocation8_spill]] %s1468_s15  ;;  %s36_s23 = sadd.s32 1, %s1480_s18 }
   0xd   : > { %1847 = sst [smem:[#allocation9_spill]] %s1476_s17  ;;  %p37_p0 = scmp.ge.s32.totalorder %s36_s23, 2 }
   0xe   : > { %1848 = sst [smem:[#allocation10_spill]] %s1480_s18  ;;  %s39_s24 = sadd.s32 1, %s1484_s19 }
   0xf   : > { %1849 = sst [smem:[#allocation11_spill]] %s1484_s19  ;;  %p380_p1 = scmp.ne.s32.totalorder %s1468_s15, %s1464_s30 }
  0x10   : > { %1850 = sst [smem:[#allocation12_spill]] %s1488_s20  ;;  %p381_p2 = scmp.eq.s32.totalorder %s1188_s21, 3 }
  0x11   : > { %s1878_s23 = smov (%p37_p0, %s36_s23), 0  ;;  %s1880_s24 = smov (!%p37_p0, %s39_s24), %s1484_s19 }
  0x12   : > { %1851 = sst [smem:[#allocation13_spill]] %s1878_s23  ;;  %p1621_p3 = por %p381_p2, %p380_p1 }
  0x13   : > { %p386_p4 = scmp.ne.s32.totalorder %s1464_s30, %s1460_s29  ;;  %p41_p5 = scmp.ge.s32.totalorder %s1880_s24, 2 }
  0x14   : > { %s1852_s25 = scalar_select %p1621_p3, 1, 0 }
  0x15   : > { %p387_p6 = scmp.eq.s32.totalorder %s1189_s22, 3  ;;  %p1192_p7 = scmp.ge.s32.totalorder %s1488_s20, 1 }
  0x16   : > { %1853 = sst [smem:[#allocation14_spill]] %s1852_s25  ;;  %p470_p8 = scmp.lt.s32.totalorder %s1488_s20, 5 }
  0x17   : > { %s1882_s24 = smov (%p41_p5, %s1880_s24), 0  ;;  %p1631_p9 = por %p387_p6, %p386_p4 }
  0x18   : > { %1854 = sst [smem:[#allocation15_spill]] %s1882_s24  ;;  %p471_p10 = pnand %p1192_p7, %p470_p8 }
  0x19   : > { %s1855_s26 = scalar_select %p1631_p9, 1, 0 }
  0x1a   : > { %s367_s27 = ssub.s32 %s1484_s19, %s1882_s24  ;;  %s370_s28 = sadd.s32 1, %s1468_s15 }
  0x1b   : > { %1856 = sst [smem:[#allocation16_spill]] %s1855_s26  ;;  %p368_p11 = scmp.eq.s32.totalorder %s367_s27, 0 }
  0x1c   : > { %474 = sbr.rel (%p471_p10) target bundleno = 1278 (0x4fe), region = 76  ;;  %s1833_s22 = sand.u32 (!%p471_p10), 1, %s1464_s30  }
  0x1d   : > { %s1639_s21 = scalar_select %p368_p11, %s1468_s15, %s370_s28  }
  0x1e   : > { %p534_p12 = scmp.lt.s32.totalorder (!%p471_p10), %s1476_s17, 1  ;;  %s1193_s23 = sshll.u32 (!%p471_p10), %s1833_s22, 4 }
  0x1f   : > { %1857 = sst [smem:[#allocation17_spill]] %s1639_s21  ;;  %p538_p13 = scmp.lt.s32.totalorder (!%p471_p10), %s1472_s16, 1 }
  0x20   : > { %s1858_s0 = sld [smem:[#allocation18_spill]] (!%p471_p10)  ;;  %s1676_s29 = scalar_lea.vmem (!%p471_p10), [#allocation3], %s1193_s23 }
  0x21   : > { %s535_s18 = scalar_select %p534_p12, %s1476_s17, 1 }
  0x22   : > { %s1648_s26 = scalar_select %p538_p13, %s1472_s16, 1 }
  0x23   : > { %s1194_s27 = sshll.u32 %s535_s18, 3  ;;  %p1199_p0 = scmp.ne.s32.totalorder %s1472_s16, 0 }
  0x24   : > { %s1230_s21 = sshll.u32 %s1648_s26, 4  ;;  %s545_s25 = scalar_lea.vmem %s1818_s8, %s1648_s26 }
  0x25   : > { %s1657_s20 = scalar_lea.vmem %s1817_s7, %s1230_s21  ;;  %s1666_s13 = scalar_lea.vmem %s1819_s9, %s1230_s21 }
  0x26   : > { %s537_s19 = scalar_lea.vmem %s1858_s0, %s1194_s27  ;;  %s553_s24 = scalar_lea.vmem %s1820_s10, %s1648_s26 }
  0x27   : > { %s556_s0 = scalar_lea.vmem %s1821_s11, %s1648_s26  ;;  %561 = sbr.rel (%p1199_p0) target bundleno = 528 (0x210), region = 80 }
  0x28   : > { %s1492_s21 = smov (!%p1199_p0), 127  }
  0x2c   : > { %v576_v0 = vld [vmem:[%s1811_s1 + $0x18] sm:$0xff]  ;;  %vm563_vm0 = vcmask 261120   ;;  %v1490_v1 = vmov 0.0   ;;  %v575_v2 = vld [vmem:[%s1811_s1 + $0x10] sm:$0xff]  ;;  %vm1491_vm1 = vmmov 0   ;;  %v562_v3 = vld [vmem:[%s537_s19] sm:$0xff] }
  0x2d   : > { %1250 = vmatprep.subr.mxu0 %v1490_v1  ;;  %1258 = vmatprep.mubr.msk.f32.mxu0 %vm1491_vm1, %v1490_v1  ;;  %v564_v4 = vsel %vm563_vm0, %v562_v3, 0.0  ;;  %v1374_v5 = vld [vmem:[%s1813_s3 + $0x8] sm:$0xff]   ;;  %v1375_v8 = vld [vmem:[%s1813_s3] sm:$0xff]   ;;  %v651_v12 = vpack.c.bf16 %v562_v3, %v562_v3 }
  0x2e   : > { %1251 = vmatpush3.msra.mxu0 %v576_v0  ;;  %1261 = vmatprep.subr.bf16.mxu1 %v1490_v1  ;;  %v574_v6 = vld [vmem:[%s1811_s1 + $0x8] sm:$0xff]  ;;  %v565_v7 = vrot.slane %v564_v4, 4  ;;  %v573_v9 = vld [vmem:[%s1811_s1] sm:$0xff] }
  0x2f   : > { %1252 = vmatprep.subr.mxu0 %v1490_v1  ;;  %1265 = vmatprep.mubr.msk.bf16.mxu1 %vm1491_vm1, %v1490_v1  ;;  %v1376_v17 = vld [vmem:[%s1815_s5 + $0x8] sm:$0xff]   ;;  %v1377_v18 = vld [vmem:[%s1815_s5] sm:$0xff]  }
  0x30   : > { %1253 = vmatpush3.msra.mxu0 %v575_v2  ;;  %1262 = vmatpush3.bf16.msra.mxu1 %v1374_v5  ;;  %v566_v10 = vadd.f32 %v565_v7, %v564_v4  ;;  %v577_v21 = vld [vmem:[%s1812_s2] sm:$0x1] }
  0x31   : > { %1254 = vmatprep.subr.mxu0 %v1490_v1  ;;  %1263 = vmatprep.subr.bf16.mxu1 %v1490_v1  ;;  %v1201_v27 = vld [vmem:[%s1814_s4] ss:$0 sm:$0xff] }
  0x32   : > { %1255 = vmatpush3.msra.mxu0 %v574_v6  ;;  %v567_v11 = vrot.slane %v566_v10, 2  ;;  %v1206_v39 = vld [vmem:[%s1816_s6] ss:$0 sm:$0xff] }
  0x33   : > { %1256 = vmatprep.subr.mxu0 %v1490_v1 }
  0x34   : > { %1257 = vmatpush3.msra.mxu0 %v573_v9  ;;  %1264 = vmatpush3.bf16.msra.mxu1 %v1375_v8  ;;  %v568_v13 = vadd.f32 %v567_v11, %v566_v10 }
  0x35   : > { %1269 = vmatprep.subr.bf16.mxu0 %v1490_v1 }
  0x36   : > { %v569_v14 = vrot.slane %v568_v13, 1 }
  0x37   : > { %1266 = vmatmul.mubr.msk.bf16.vlgmr.msra.gmra.mxu1 %vm563_vm0, %v651_v12 }
  0x38   : > { %v570_v15 = vadd.f32 %v569_v14, %v568_v13 }
  0x3a   : > { %v572_v16 = vmul.f32 0.125, %v570_v15 }
  0x3c   : > { %1259 = vmatmul.mubr.msk.f32.vlgmr.msra.gmra.mxu0 %vm563_vm0, %v572_v16 }
  0x3d   : > { %1273 = vmatprep.mubr.msk.bf16.mxu0 %vm1491_vm1, %v1490_v1  ;;  %1270 = vmatpush3.bf16.msra.mxu0 %v1376_v17 }
  0x3e   : > { %1271 = vmatprep.subr.bf16.mxu0 %v1490_v1 }
  0x41   : > { %1272 = vmatpush3.bf16.msra.mxu0 %v1377_v18 }
  0xf7   : > { %v712_v19 = vpop.f32.mrf.mxu1 }
  0xf8   : > { %v713_v28 = vadd.f32 %v1201_v27, %v712_v19 }
  0xf9   : > { %v1267_v20 = vpop.f32.mrf.mxu1 }
  0xfa   : > { %v1205_v29 = vmul.f32 -1.442695, %v713_v28 }
  0xfb   : > { %v715_v22 = vpop.f32.mrf.mxu1 }
  0xfc   : > { %v647_v23 = vpop.f32.mrf.mxu0  ;;  %1378 = vpow2.f32 %v1205_v29 }
  0xfd   : > { %v1268_v24 = vpop.f32.mrf.mxu1  ;;  %v648_v25 = vadd.f32 %v647_v23, %v577_v21 }
  0xfe   : > { %v1260_v26 = vpop.f32.mrf.mxu0 }
  0xff   : > { %1293 = vpush %v648_v25  ;;  %799 = vrot.lane.b32.xlu0 %v648_v25, %s1492_s21 }
 0x109   : > { %v1379_v30 = vpop.eup %1378 }
 0x10a   : > { %v721_v31 = vadd.f32 1.0, %v1379_v30 }
 0x10c   : > { %1380 = vrcp.f32 %v721_v31 }
 0x119   : > { %v1381_v32 = vpop.eup %1380 }
 0x130   : > { %s1294_s27 = spop %1293 }
 0x131   : > { %v726_v33 = vstv %s1294_s27 }
 0x132   : > { %v728_v34 = vmul.f32 %v1381_v32, %v726_v33 }
 0x134   : > { %v729_v35 = vadd.f32 1.0, %v728_v34 }
 0x136   : > { %v730_v36 = vmul.f32 %v729_v35, %v562_v3 }
 0x138   : > { %v731_v37 = vpack.c.bf16 %v730_v36, %v730_v36 }
 0x13a   : > { %1274 = vmatmul.mubr.msk.bf16.vlgmr.msra.gmra.mxu0 %vm563_vm0, %v731_v37 }
 0x171   : > { %v800_v38 = vpop.permute.xlu0 %799 }
 0x172   : > { %1295 = vpush %v800_v38 }
 0x1a3   : > { %s1296_s14 = spop %1295 }
 0x1a4   : > { %v802_v46 = vstv %s1296_s14 }
 0x1fa   : > { %v792_v40 = vpop.f32.mrf.mxu0 }
 0x1fb   : > { %v793_v41 = vadd.f32 %v1206_v39, %v792_v40 }
 0x1fc   : > { %v1275_v42 = vpop.f32.mrf.mxu0 }
 0x1fd   : > { %1382 = vtanh.f32 %v793_v41 }
 0x1fe   : > { %v795_v43 = vpop.f32.mrf.mxu0 }
 0x200   : > { %v1276_v44 = vpop.f32.mrf.mxu0 }
 0x20a   : > { %v1383_v45 = vpop.eup %1382 }
 0x20b   : > { %v804_v47 = vmul.f32 %v1383_v45, %v802_v46 }
 0x20d   : > { %v805_v48 = vadd.f32 %v804_v47, %v730_v36 }
 0x20f   : > { %806 = vst.msk [vmem:[#allocation2] sm:$0xff] %vm563_vm0, %v805_v48 }
 0x210 PF: > { %v1384_v49 = vld [vmem:[%s1657_s20 + $0x8] sm:$0xff]   ;;  %v1493_v50 = vmov 0.0   ;;  %v1386_v52 = vld [vmem:[%s1657_s20] sm:$0xff]   ;;  %vm1494_vm2 = vmmov 0   ;;  %vm832_vm3 = vcmask 261120   ;;  %p1219_p1 = scmp.ne.s32.totalorder %s1472_s16, 1 }
 0x211   : > { %1277 = vmatprep.subr.bf16.mxu0 %v1493_v50  ;;  %1285 = vmatprep.subr.bf16.mxu1 %v1493_v50  ;;  %v1385_v51 = vld [vmem:[%s1666_s13 + $0x8] sm:$0xff]   ;;  %v1387_v53 = vld [vmem:[%s1666_s13] sm:$0xff]   ;;  %s1859_s21 = sld [smem:[#allocation19_spill]] (!%p1219_p1) }
 0x212   : > { %1278 = vmatpush3.bf16.msra.mxu0 %v1384_v49  ;;  %1281 = vmatprep.mubr.msk.bf16.mxu0 %vm1494_vm2, %v1493_v50  ;;  %v1210_v56 = vld [vmem:[%s545_s25] ss:$0 sm:$0xff]  ;;  %s1860_s28 = sld [smem:[#allocation20_spill]] (!%p1219_p1) }
 0x213   : > { %1286 = vmatpush3.bf16.msra.mxu1 %v1385_v51  ;;  %1279 = vmatprep.subr.bf16.mxu0 %v1493_v50  ;;  %v1217_v14 = vld [vmem:[%s553_s24] ss:$0 sm:$0xff] }
 0x214   : > { %1287 = vmatprep.subr.bf16.mxu1 %v1493_v50  ;;  %1289 = vmatprep.mubr.msk.bf16.mxu1 %vm1494_vm2, %v1493_v50  ;;  %v1218_v16 = vld [vmem:[%s556_s0] ss:$0 sm:$0xff] }
 0x216   : > { %v807_v54 = vld [vmem:[#allocation2] sm:$0xff]  ;;  %1280 = vmatpush3.bf16.msra.mxu0 %v1386_v52 }
 0x217   : > { %v808_v55 = vpack.c.bf16 %v807_v54, %v807_v54  ;;  %1288 = vmatpush3.bf16.msra.mxu1 %v1387_v53 }
 0x219   : > { %1282 = vmatmul.mubr.msk.bf16.vlgmr.msra.gmra.mxu0 %vm832_vm3, %v808_v55 }
 0x21a   : > { %1290 = vmatmul.mubr.msk.bf16.vlgmr.msra.gmra.mxu1 %vm832_vm3, %v808_v55 }
 0x2d9   : > { %v870_v57 = vpop.f32.mrf.mxu0 }
 0x2da   : > { %v871_v58 = vadd.f32 %v1210_v56, %v870_v57  ;;  %v926_v59 = vpop.f32.mrf.mxu1 }
 0x2db   : > { %v1283_v60 = vpop.f32.mrf.mxu0 }
 0x2dc   : > { %v932_v61 = vadd.f32 %v871_v58, %v807_v54  ;;  %v1291_v62 = vpop.f32.mrf.mxu1 }
 0x2dd   : > { %v873_v63 = vpop.f32.mrf.mxu0 }
 0x2de   : > { %v933_v0 = vadd.f32 %v932_v61, %v926_v59  ;;  %v929_v1 = vpop.f32.mrf.mxu1 }
 0x2df   : > { %v1284_v2 = vpop.f32.mrf.mxu0 }
 0x2e0   : > { %v1292_v3 = vpop.f32.mrf.mxu1  ;;  %v934_v4 = vsel %vm832_vm3, %v933_v0, 0.0 }
 0x2e1   : > { %935 = vadd.xlane.f32.xlu0 %v934_v4 }
 0x36a   : > { %v936_v5 = vpop.xlane.xlu0 %935 }
 0x36b   : > { %v938_v6 = vmul.f32 0.03125, %v936_v5 }
 0x36d   : > { %v939_v7 = vsub.f32 %v933_v0, %v938_v6 }
 0x36f   : > { %v940_v8 = vmul.f32 %v939_v7, %v939_v7 }
 0x371   : > { %v941_v9 = vsel %vm832_vm3, %v940_v8, 0.0 }
 0x372   : > { %942 = vadd.xlane.f32.xlu0 %v941_v9 }
 0x3fb   : > { %v943_v10 = vpop.xlane.xlu0 %942 }
 0x3fc   : > { %v944_v11 = vmul.f32 0.03125, %v943_v10 }
 0x3fe   : > { %v945_v12 = vadd.f32 1e-05, %v944_v11 }
 0x400   : > { %1388 = vrsqrt.f32 %v945_v12 }
 0x40d   : > { %v1389_v13 = vpop.eup %1388 }
 0x40e   : > { %v947_v15 = vmul.f32 %v1389_v13, %v939_v7 }
 0x410   : > { %v955_v17 = vmul.f32 %v1217_v14, %v947_v15  ;;  %968 = sbr.rel (%p1219_p1) target bundleno = 1253 (0x4e5), region = 84 }
 0x412   : > { %v963_v18 = vadd.f32 %v1218_v16, %v955_v17 }
 0x414   : > { %964 = vst.msk [vmem:[#allocation2] sm:$0xff] %vm832_vm3, %v963_v18 }
 0x415   : > { %v1390_v19 = vld [vmem:[%s1859_s21 + $0x14] ss:$8 sps:$4 sm:$0xff]   ;;  %v1392_v20 = vld [vmem:[%s1859_s21 + $0x10] ss:$8 sps:$4 sm:$0xff]   ;;  %v1495_v21 = vmov 0   ;;  %v969_v24 = vpack.c.bf16 %v963_v18, %v963_v18  ;;  %v976_v25 = vlaneseq }
 0x416   : > { %1041 = vmatprep.mubr.bf16.mxu0 %v1495_v21  ;;  %1021 = vmatprep.subr.bf16.mxu0 %v1390_v19  ;;  %v1393_v22 = vld [vmem:[%s1859_s21 + $0x4] ss:$8 sps:$4 sm:$0xff]   ;;  %v1395_v23 = vld [vmem:[%s1859_s21] ss:$8 sps:$4 sm:$0xff]  }
 0x417   : > { %1022 = vmatpush1.bf16.msra.mxu0 %v1392_v20  ;;  %v977_v26 = vshrl.u32 %v976_v25, 7  ;;  %v974_v28 = vld [vmem:[%s1860_s28] sm:$0x3] }
 0x418   : > { %1023 = vmatprep.subr.bf16.mxu0 %v1393_v22 }
 0x419   : > { %v978_v27 = vsub.s32 0, %v977_v26  ;;  %v982_v29 = vsub.s32 1, %v977_v26 }
 0x41b   : > { %1024 = vmatpush1.bf16.msra.mxu0 %v1395_v23  ;;  %v979_v30 = vrot.slane %v974_v28, %v978_v27  ;;  %v983_v31 = vrot.slane %v974_v28, %v982_v29 }
 0x41e   : > { %1224 = vmatmul.mubr.msk.bf16.vlgmr.msra.gmra.mxu0 %vm832_vm3, %v969_v24 }
 0x4de   : > { %v1043_v32 = vpop.f32.mrf.mxu0 }
 0x4df   : > { %v1044_v33 = vadd.f32 %v1043_v32, %v979_v30 }
 0x4e0   : > { %v1045_v34 = vpop.f32.mrf.mxu0 }
 0x4e1   : > { %1050 = vst [vmem:[%s1676_s29] sm:$0xff] %v1044_v33  ;;  %v1046_v35 = vadd.f32 %v1045_v34, %v983_v31 }
 0x4e2   : > { %v1047_v36 = vpop.f32.mrf.mxu0 }
 0x4e3   : > { %1051 = vst [vmem:[%s1676_s29 + $0x8] sm:$0xff] %v1046_v35 }
 0x4e4   : > { %v1048_v37 = vpop.f32.mrf.mxu0 }
 0x4e5 PF: > { %s1861_s14 = sld [smem:[#allocation9_spill]]  ;;  %s1067_s22 = sshll.u32 %s1676_s29, 4  ;;  %s1068_s22 = int_to_ptr.vmem [resolvable:$true] %s1067_s22 }
 0x4e6   : > { %s1862_s15 = sld [smem:[#allocation7_spill]]  ;;  %s1396_s0 = scalar_lea.vmem %s1068_s22, 256 }
 0x4e7   : > { %s1864_s17 = sld [smem:[#allocation21_spill]]  ;;  %p1397_p2 = scmp.ne.s32.totalorder %s1068_s22, %s1396_s0 }
 0x4e8   : > { %s1496_s24 = smov [#allocation3]  }
 0x4e9   : > { %p1398_p4 = pnand %p1397_p2, %p1621_p3  ;;  %s1400_s27 = sshll.u32 %s1496_s24, 4  ;;  %s1401_s27 = int_to_ptr.vmem [resolvable:$false] %s1400_s27 }
 0x4ea   : > { %s1402_s16 = scalar_lea.vmem %s1401_s27, 512  ;;  %p1403_p6 = scmp.lt.s32.totalorder %s1068_s22, %s1401_s27 }
 0x4eb   : > { %s1232_s13 = sshll.u32 %s1861_s14, 8  ;;  %p1399_p5 = pneg %p1398_p4 }
 0x4ec   : > { %s1866_s18 = sand.u32 1, %s1862_s15   ;;  %p1404_p7 = scmp.lt.s32.totalorder %s1402_s16, %s1396_s0 }
 0x4ed   : > { %s1865_s12 = smov %s1864_s17  ;;  %s1065_s23 = scalar_lea.hbm %s1864_s17, %s1232_s13 }
 0x4ee   : > { %s1053_s26 = scalar_lea.sflag [#allocation4], %s1866_s18  ;;  %p1405_p8 = por %p1404_p7, %p1403_p6 }
 0x4f0   : > { %p1406_p10 = pnand %p1405_p8, %p1399_p5 }
 0x4f2   : > { %1409 = shalt.err (!%p1406_p10)
}
 0x4f3   : > { %s1410_s19 = scalar_lea.hbm %s1065_s23, 256  ;;  %s1414_s14 = scalar_lea.hbm %s1865_s12, 512 }
 0x4f4   : > { %p1411_p11 = scmp.ne.s32.totalorder %s1065_s23, %s1410_s19  ;;  %p1415_p0 = scmp.lt.s32.totalorder %s1065_s23, %s1865_s12 }
 0x4f5   : > { %p1416_p1 = scmp.lt.s32.totalorder %s1414_s14, %s1410_s19 }
 0x4f6   : > { %p1412_p12 = pnand %p1411_p11, %p1621_p3 }
 0x4f7   : > { %p1417_p2 = por %p1416_p1, %p1415_p0 }
 0x4f8   : > { %p1413_p13 = pneg %p1412_p12 }
 0x4fa   : > { %p1418_p4 = pnand %p1417_p2, %p1413_p13 }
 0x4fc   : > { %1421 = shalt.err (!%p1418_p4)
}
 0x4fd   : > { %1297 = dma.vmem_to_hbm [thread:$0]  (%p1621_p3), %s1068_s22, 256, %s1065_s23, %s1053_s26  }
 0x4fe PF: > { %s1867_s20 = sld [smem:[#allocation12_spill]] }
 0x4ff   : > { %s1868_s25 = sld [smem:[#allocation6_spill]] }
 0x504   : > { %p1303_p5 = scmp.ge.s32.totalorder %s1867_s20, 2 }
 0x505   : > { %s1079_s18 = sand.u32 1, %s1868_s25  }
 0x506   : > { %p1300_p6 = pnand %p1303_p5, %p1631_p9  ;;  %s1080_s0 = scalar_lea.sflag [#allocation4], %s1079_s18 }
 0x508   : > { %p1301_p7 = pneg %p1300_p6 }
 0x50a   : > { %1455 = dma.done.wait (%p1301_p7), %s1080_s0, 256  }
 0x50b   : > { %1457 = vsyncadd (%p1301_p7), %s1080_s0, 4294967040  ;;  %s27_s20 = sadd.s32 1, %s1867_s20   ;;  %s1870_s29 = sld [smem:[#allocation7_spill]] }
 0x50c   : > { %p24_p8 = scmp.ge.s32.totalorder %s27_s20, 6   ;;  %s1871_s30 = sld [smem:[#allocation8_spill]] }
 0x50d   : > { %s1872_s15 = sld [smem:[#allocation17_spill]] }
 0x50e   : > { %s1873_s16 = sld [smem:[#allocation10_spill]]  ;;  %26 = sbr.rel (!%p24_p8) target bundleno = 10 (0xa), region = 134 }
 0x50f   : > { %s1874_s17 = sld [smem:[#allocation11_spill]] }
 0x510   : > { %s1875_s18 = sld [smem:[#allocation13_spill]] }
 0x511   : > { %s1876_s19 = sld [smem:[#allocation15_spill]] }
 0x513   :  { %1085 = vsyncpa [#allocation4], 1 }
 0x514   :  { %1087 = vsyncpa [#allocation4 + $0x1], 1 }

</bundles_post_ra>
